<compile_context>
chip_gen: v7x
topology: tpu7x:2x2x1
jax: 0.10.0
libtpu: 0.0.40
codegen_flags: <defaults>
</compile_context>

<pallas_src>
import functools

import jax
import jax.numpy as jnp
from jax import lax
from jax.experimental import pallas as pl
from jax.experimental.pallas import tpu as pltpu


# ---------------------------------------------------------------------------
# Kernel bodies
# ---------------------------------------------------------------------------

def _excite(s, w1t, b1, w2t, b2, use_mxu):
    """Two 1x1-conv FCs + Swish + sigmoid on the pooled vector s (BN, C)."""
    if use_mxu:
        # Realistic channel counts / batched tiles: tiny MXU matmuls, fully
        # hidden under the memory stream. HIGHEST precision keeps f32 parity.
        h = jnp.dot(s, w1t, preferred_element_type=jnp.float32,
                    precision=lax.Precision.HIGHEST) + b1                      # (BN, R)
        h = h * jax.nn.sigmoid(h)                                              # Swish
        z = jnp.dot(h, w2t, preferred_element_type=jnp.float32,
                    precision=lax.Precision.HIGHEST) + b2                      # (BN, C)
    else:
        # Truly tiny C/R: broadcast-multiply + sublane reduce on the VPU.
        # No in-kernel transposes: contraction axis sits on axis=1.
        h = jnp.sum(s[:, :, None] * w1t[None, :, :], axis=1) + b1              # (BN, R)
        h = h * jax.nn.sigmoid(h)                                              # Swish
        z = jnp.sum(h[:, :, None] * w2t[None, :, :], axis=1) + b2              # (BN, C)
    return jax.nn.sigmoid(z)                                                   # (BN, C)


def _se_fused_kernel(x_ref, w1t_ref, b1_ref, w2t_ref, b2_ref, o_ref,
                     *, inv_hw: float, use_mxu: bool):
    """Single-pass kernel: whole (BN, C, HW) tile resident in VMEM."""
    # Squeeze: global average pool; widening fused into the reduction.
    s = jnp.sum(x_ref[...], axis=2, dtype=jnp.float32) * inv_hw                # (BN, C)
    scale = _excite(s, w1t_ref[...], b1_ref[...], w2t_ref[...], b2_ref[...],
                    use_mxu)
    # Recalibrate: single fused multiply-and-store in the input dtype.
    o_ref[...] = x_ref[...] * scale.astype(o_ref.dtype)[:, :, None]


def _se_split_kernel(x_ref, w1t_ref, b1_ref, w2t_ref, b2_ref, o_ref,
                     acc_ref, scale_ref, *, inv_hw: float, use_mxu: bool):
    """Two-phase kernel for samples whose (C, HW) slab does not fit a tile.

    grid = (N, 2, n_hw):
      phase 0 : stream HW chunks, accumulate the channel sums; on the last
                chunk run the excite FCs and stash the per-sample scale.
      phase 1 : stream HW chunks again and write x * scale.
    """
    phase = pl.program_id(1)
    hw = pl.program_id(2)
    last_hw = pl.num_programs(2) - 1

    @pl.when(jnp.logical_and(phase == 0, hw == 0))
    def _():
        acc_ref[...] = jnp.zeros_like(acc_ref)

    @pl.when(phase == 0)
    def _():
        acc_ref[...] += jnp.sum(x_ref[...], axis=2, dtype=jnp.float32)         # (1, C)

    @pl.when(jnp.logical_and(phase == 0, hw == last_hw))
    def _():
        s = acc_ref[...] * inv_hw
        scale_ref[...] = _excite(s, w1t_ref[...], b1_ref[...],
                                 w2t_ref[...], b2_ref[...], use_mxu)

    @pl.when(phase == 1)
    def _():
        o_ref[...] = x_ref[...] * scale_ref[...].astype(o_ref.dtype)[:, :, None]


# ---------------------------------------------------------------------------
# Wrapper
# ---------------------------------------------------------------------------

def _largest_divisor_leq(n: int, cap: int) -> int:
    cap = max(1, min(n, cap))
    for d in range(cap, 0, -1):
        if n % d == 0:
            return d
    return 1


def _chip_profile():
    """Generation-aware tiling knobs.

    v7x-like (<=64 MiB physical VMEM, 2 TensorCores): modest tiles, 48 MiB
    scoped limit (headroom for compiler scratch), force >=2 grid steps.
    v5e/v6e (128 MiB VMEM, 1 TC): big tiles, 96 MiB limit, no forced split.
    """
    vmem_cap = None
    try:
        vmem_cap = int(getattr(pltpu.get_tpu_info(), "vmem_capacity_bytes"))
    except Exception:
        vmem_cap = None
    kind = ""
    try:
        kind = jax.devices()[0].device_kind.lower()
    except Exception:
        pass
    small_vmem = (vmem_cap is not None and vmem_cap <= (64 << 20)) or ("v7" in kind)
    if small_vmem:
        return {"vmem_budget": 48 << 20, "tile_bytes": 4 << 20, "multi_tc": True}
    return {"vmem_budget": 96 << 20, "tile_bytes": 8 << 20, "multi_tc": False}


def squeeze_excitation(x, w1, b1, w2, b2, *, target_tile_bytes: int | None = None):
    """x: (N, C, H, W). w1: (R, C), b1: (R,), w2: (C, R), b2: (C,).

    Equivalent to:  x * sigmoid(conv1x1(swish(conv1x1(avg_pool(x)))))
    """
    N, C, H, W = x.shape
    R = w1.shape[0]
    HW = H * W
    itemsize = jnp.dtype(x.dtype).itemsize

    profile = _chip_profile()
    if target_tile_bytes is None:
        target_tile_bytes = profile["tile_bytes"]
    vmem_budget = profile["vmem_budget"]

    # Native NCHW flattening; spatial stays on the lane axis. No wrapper-side
    # transposes (each would be an extra full-tensor HBM round trip).
    x_flat = x.reshape(N, C, HW)

    # Grid-invariant operands: transpose + cast once here, not per grid step.
    w1t = jnp.asarray(w1, jnp.float32).T          # (C, R)
    w2t = jnp.asarray(w2, jnp.float32).T          # (R, C)
    b1_2d = jnp.asarray(b1, jnp.float32).reshape(1, R)
    b2_2d = jnp.asarray(b2, jnp.float32).reshape(1, C)
    weight_bytes = 4 * (C * R + R + R * C + C)

    per_sample_bytes = C * HW * itemsize
    use_hw_split = (per_sample_bytes > target_tile_bytes) and (HW % 128 == 0)

    weight_specs = lambda nargs: None  # placeholder to keep structure obvious

    if use_hw_split:
        # ---- Two-phase HW-split path (big feature maps / small VMEM). ----
        m = HW // 128
        d_cap = max(1, target_tile_bytes // (C * 128 * itemsize))
        d = _largest_divisor_leq(m, d_cap)
        thw = 128 * d
        n_hw = HW // thw

        tile_bytes = C * thw * itemsize
        vmem_bytes = int(min(max(4 * tile_bytes + 4 * weight_bytes + (2 << 20),
                                 32 << 20), vmem_budget))
        use_mxu = C >= 256

        kernel = functools.partial(_se_split_kernel, inv_hw=1.0 / HW,
                                   use_mxu=use_mxu)

        out_flat = pl.pallas_call(
            kernel,
            out_shape=jax.ShapeDtypeStruct(x_flat.shape, x.dtype),
            grid_spec=pltpu.PrefetchScalarGridSpec(
                num_scalar_prefetch=0,
                grid=(N, 2, n_hw),
                in_specs=[
                    pl.BlockSpec((1, C, thw), lambda i, p, h: (i, 0, h)),
                    pl.BlockSpec((C, R), lambda i, p, h: (0, 0)),   # w1t resident
                    pl.BlockSpec((1, R), lambda i, p, h: (0, 0)),   # b1  resident
                    pl.BlockSpec((R, C), lambda i, p, h: (0, 0)),   # w2t resident
                    pl.BlockSpec((1, C), lambda i, p, h: (0, 0)),   # b2  resident
                ],
                # Phase 0 keeps the output window pinned at chunk 0 (no garbage
                # writebacks); phase 1 walks the chunks and writes real data.
                out_specs=pl.BlockSpec((1, C, thw), lambda i, p, h: (i, 0, h * p)),
                scratch_shapes=[
                    pltpu.VMEM((1, C), jnp.float32),   # squeeze partial sums
                    pltpu.VMEM((1, C), jnp.float32),   # per-sample scale
                ],
            ),
            compiler_params=pltpu.CompilerParams(
                dimension_semantics=("parallel", "arbitrary", "arbitrary"),
                vmem_limit_bytes=vmem_bytes,
            ),
        )(x_flat, w1t, b1_2d, w2t, b2_2d)
        return out_flat.reshape(N, C, H, W)

    # ---- Single-pass path: whole (BN, C, HW) tile in VMEM. ----
    # TODO(synk): if per_sample_bytes > target_tile_bytes and HW is not a
    # multiple of 128, we fall through here with BN=1 and a larger VMEM
    # request; a masked/padded HW split would cover that corner too.
    bn_cap = max(1, target_tile_bytes // per_sample_bytes)
    if profile["multi_tc"] and N >= 2:
        # Keep >= 2 grid steps only on 2-TC chips (v7x); on 1-TC chips the
        # split just shrinks tiles for no parallelism gain.
        bn_cap = min(bn_cap, N // 2)
    BN = _largest_divisor_leq(N, bn_cap)
    grid = (N // BN,)

    tile_bytes = BN * per_sample_bytes
    vmem_bytes = int(min(max(4 * tile_bytes + 4 * weight_bytes + (2 << 20),
                             32 << 20), vmem_budget))
    use_mxu = (C >= 256) or (BN >= 8)

    kernel = functools.partial(_se_fused_kernel, inv_hw=1.0 / HW, use_mxu=use_mxu)

    out_flat = pl.pallas_call(
        kernel,
        out_shape=jax.ShapeDtypeStruct(x_flat.shape, x.dtype),
        grid_spec=pltpu.PrefetchScalarGridSpec(
            num_scalar_prefetch=0,
            grid=grid,
            in_specs=[
                pl.BlockSpec((BN, C, HW), lambda i: (i, 0, 0)),   # x tile
                pl.BlockSpec((C, R), lambda i: (0, 0)),           # w1t (resident)
                pl.BlockSpec((1, R), lambda i: (0, 0)),           # b1  (resident)
                pl.BlockSpec((R, C), lambda i: (0, 0)),           # w2t (resident)
                pl.BlockSpec((1, C), lambda i: (0, 0)),           # b2  (resident)
            ],
            out_specs=pl.BlockSpec((BN, C, HW), lambda i: (i, 0, 0)),
        ),
        compiler_params=pltpu.CompilerParams(
            dimension_semantics=("parallel",),
            vmem_limit_bytes=vmem_bytes,
        ),
    )(x_flat, w1t, b1_2d, w2t, b2_2d)

    return out_flat.reshape(N, C, H, W)


# ---------------------------------------------------------------------------
# Reference + tests
# ---------------------------------------------------------------------------

def _reference(x, w1, b1, w2, b2):
    """Pure-JAX reference mirroring the PyTorch forward (f32, HIGHEST dots)."""
    hi = lax.Precision.HIGHEST
    s = jnp.mean(x, axis=(2, 3))                               # (N, C)
    h = jnp.dot(s, w1.T, precision=hi) + b1                    # (N, R)
    h = h * jax.nn.sigmoid(h)                                  # Swish
    z = jnp.dot(h, w2.T, precision=hi) + b2                    # (N, C)
    scale = jax.nn.sigmoid(z)[:, :, None, None]                # (N, C, 1, 1)
    return x * scale


def _make_inputs(key, N, C, H, W, R):
    kx, k1, k2, k3, k4 = jax.random.split(key, 5)
    x = jax.random.normal(kx, (N, C, H, W), dtype=jnp.float32)
    w1 = 0.3 * jax.random.normal(k1, (R, C), dtype=jnp.float32)   # Conv2d(C->R, k=1).weight
    b1 = 0.1 * jax.random.normal(k2, (R,), dtype=jnp.float32)
    w2 = 0.3 * jax.random.normal(k3, (C, R), dtype=jnp.float32)   # Conv2d(R->C, k=1).weight
    b2 = 0.1 * jax.random.normal(k4, (C,), dtype=jnp.float32)
    return x, w1, b1, w2, b2


if __name__ == "__main__":
    key = jax.random.PRNGKey(0)
    k0, k1, k2, k3 = jax.random.split(key, 4)

    # 1) Primary: small shapes implied by the module (single-pass, VPU excite).
    x, w1, b1, w2, b2 = _make_inputs(k0, 2, 4, 16, 16, 2)
    out = jax.block_until_ready(squeeze_excitation(x, w1, b1, w2, b2))
    ref = _reference(x, w1, b1, w2, b2)
    assert out.shape == (2, 4, 16, 16)
    assert jnp.allclose(out, ref, atol=1e-5, rtol=1e-5), "mismatch (single-pass / VPU)"

    # 2) Batched tile -> MXU excite path (precision=HIGHEST keeps it tight).
    x, w1, b1, w2, b2 = _make_inputs(k1, 16, 8, 16, 16, 4)
    out = jax.block_until_ready(squeeze_excitation(x, w1, b1, w2, b2))
    ref = _reference(x, w1, b1, w2, b2)
    assert jnp.allclose(out, ref, atol=1e-5, rtol=1e-5), "mismatch (single-pass / MXU)"

    # 3) Two-phase HW-split path, forced via a tiny tile budget so the small
    #    test shape exercises the big-feature-map code (HW=256 -> 2 chunks).
    x, w1, b1, w2, b2 = _make_inputs(k2, 2, 8, 16, 16, 4)
    out = jax.block_until_ready(
        squeeze_excitation(x, w1, b1, w2, b2, target_tile_bytes=4096))
    ref = _reference(x, w1, b1, w2, b2)
    assert jnp.allclose(out, ref, atol=1e-5, rtol=1e-5), "mismatch (HW-split)"

    # 4) Non-lane-dense spatial (HW=49) kept in native layout (masked stores,
    #    no wrapper-side transposes / extra HBM passes).
    x, w1, b1, w2, b2 = _make_inputs(k3, 2, 128, 7, 7, 8)
    out = jax.block_until_ready(squeeze_excitation(x, w1, b1, w2, b2))
    ref = _reference(x, w1, b1, w2, b2)
    assert jnp.allclose(out, ref, atol=1e-5, rtol=1e-5), "mismatch (native HW=49)"

    print("KERNEL_OK")
</pallas_src>

<mosaic_0001>
module attributes {stable_mosaic.version = 11 : i64} {
  func.func @_se_fused_kernel(%arg0: i32, %arg1: memref<2x4x256xf32, #tpu.memory_space<vmem>>, %arg2: memref<4x2xf32, #tpu.memory_space<vmem>>, %arg3: memref<1x2xf32, #tpu.memory_space<vmem>>, %arg4: memref<2x4xf32, #tpu.memory_space<vmem>>, %arg5: memref<1x4xf32, #tpu.memory_space<vmem>>, %arg6: memref<2x4x256xf32, #tpu.memory_space<vmem>>) attributes {dimension_semantics = [#tpu.dimension_semantics<parallel>], iteration_bounds = array<i64: 1>, scalar_prefetch = 0 : i64, scratch_operands = 0 : i64, tpu.core_type = #tpu.core_type<tc>, window_params = [{transform_indices = @transform_0, window_bounds = array<i64: 2, 4, 256>}, {pipeline_mode = #tpu.pipeline_mode<synchronous>, transform_indices = @transform_1, window_bounds = array<i64: 4, 2>}, {pipeline_mode = #tpu.pipeline_mode<synchronous>, transform_indices = @transform_2, window_bounds = array<i64: 1, 2>}, {pipeline_mode = #tpu.pipeline_mode<synchronous>, transform_indices = @transform_3, window_bounds = array<i64: 2, 4>}, {pipeline_mode = #tpu.pipeline_mode<synchronous>, transform_indices = @transform_4, window_bounds = array<i64: 1, 4>}, {transform_indices = @transform_5, window_bounds = array<i64: 2, 4, 256>}]} {
    %c0 = arith.constant 0 : index
    %c0_0 = arith.constant 0 : index
    %c0_1 = arith.constant 0 : index
    %0 = vector.load %arg1[%c0, %c0_0, %c0_1] : memref<2x4x256xf32, #tpu.memory_space<vmem>>, vector<2x4x256xf32>
    %cst = arith.constant dense<0.000000e+00> : vector<2x4xf32>
    %1 = vector.multi_reduction <add>, %0, %cst [2] : vector<2x4x256xf32> to vector<2x4xf32>
    %cst_2 = arith.constant 3.906250e-03 : f32
    %2 = vector.broadcast %cst_2 : f32 to vector<2x4xf32>
    %3 = arith.mulf %1, %2 : vector<2x4xf32>
    %c0_3 = arith.constant 0 : index
    %c0_4 = arith.constant 0 : index
    %4 = vector.load %arg2[%c0_3, %c0_4] : memref<4x2xf32, #tpu.memory_space<vmem>>, vector<4x2xf32>
    %c0_5 = arith.constant 0 : index
    %c0_6 = arith.constant 0 : index
    %5 = vector.load %arg3[%c0_5, %c0_6] : memref<1x2xf32, #tpu.memory_space<vmem>>, vector<1x2xf32>
    %c0_7 = arith.constant 0 : index
    %c0_8 = arith.constant 0 : index
    %6 = vector.load %arg4[%c0_7, %c0_8] : memref<2x4xf32, #tpu.memory_space<vmem>>, vector<2x4xf32>
    %c0_9 = arith.constant 0 : index
    %c0_10 = arith.constant 0 : index
    %7 = vector.load %arg5[%c0_9, %c0_10] : memref<1x4xf32, #tpu.memory_space<vmem>>, vector<1x4xf32>
    %8 = vector.shape_cast %3 : vector<2x4xf32> to vector<2x4x1xf32>
    %9 = vector.shape_cast %4 : vector<4x2xf32> to vector<1x4x2xf32>
    %10 = vector.broadcast %8 : vector<2x4x1xf32> to vector<2x4x2xf32>
    %11 = vector.broadcast %9 : vector<1x4x2xf32> to vector<2x4x2xf32>
    %12 = arith.mulf %10, %11 : vector<2x4x2xf32>
    %cst_11 = arith.constant dense<0.000000e+00> : vector<2x2xf32>
    %13 = vector.multi_reduction <add>, %12, %cst_11 [1] : vector<2x4x2xf32> to vector<2x2xf32>
    %14 = vector.broadcast %5 : vector<1x2xf32> to vector<2x2xf32>
    %15 = arith.addf %13, %14 : vector<2x2xf32>
    %16 = arith.negf %15 : vector<2x2xf32>
    %17 = math.exp %16 : vector<2x2xf32>
    %cst_12 = arith.constant 1.000000e+00 : f32
    %18 = vector.broadcast %cst_12 : f32 to vector<2x2xf32>
    %19 = arith.addf %18, %17 : vector<2x2xf32>
    %20 = arith.divf %18, %19 : vector<2x2xf32>
    %21 = arith.mulf %15, %20 : vector<2x2xf32>
    %22 = vector.shape_cast %21 : vector<2x2xf32> to vector<2x2x1xf32>
    %23 = vector.shape_cast %6 : vector<2x4xf32> to vector<1x2x4xf32>
    %24 = vector.broadcast %22 : vector<2x2x1xf32> to vector<2x2x4xf32>
    %25 = vector.broadcast %23 : vector<1x2x4xf32> to vector<2x2x4xf32>
    %26 = arith.mulf %24, %25 : vector<2x2x4xf32>
    %cst_13 = arith.constant dense<0.000000e+00> : vector<2x4xf32>
    %27 = vector.multi_reduction <add>, %26, %cst_13 [1] : vector<2x2x4xf32> to vector<2x4xf32>
    %28 = vector.broadcast %7 : vector<1x4xf32> to vector<2x4xf32>
    %29 = arith.addf %27, %28 : vector<2x4xf32>
    %30 = arith.negf %29 : vector<2x4xf32>
    %31 = math.exp %30 : vector<2x4xf32>
    %cst_14 = arith.constant 1.000000e+00 : f32
    %32 = vector.broadcast %cst_14 : f32 to vector<2x4xf32>
    %33 = arith.addf %32, %31 : vector<2x4xf32>
    %34 = arith.divf %32, %33 : vector<2x4xf32>
    %c0_15 = arith.constant 0 : index
    %c0_16 = arith.constant 0 : index
    %c0_17 = arith.constant 0 : index
    %35 = vector.load %arg1[%c0_15, %c0_16, %c0_17] : memref<2x4x256xf32, #tpu.memory_space<vmem>>, vector<2x4x256xf32>
    %36 = vector.shape_cast %34 : vector<2x4xf32> to vector<2x4x1xf32>
    %37 = vector.broadcast %36 : vector<2x4x1xf32> to vector<2x4x256xf32>
    %38 = arith.mulf %35, %37 : vector<2x4x256xf32>
    %c0_18 = arith.constant 0 : index
    %c0_19 = arith.constant 0 : index
    %c0_20 = arith.constant 0 : index
    %39 = vector.load %arg6[%c0_18, %c0_19, %c0_20] : memref<2x4x256xf32, #tpu.memory_space<vmem>>, vector<2x4x256xf32>
    tpu.vector_store %arg6[%c0_18, %c0_19, %c0_20], %38 {strides = array<i32>} : memref<2x4x256xf32, #tpu.memory_space<vmem>>, vector<2x4x256xf32>,
    return
  }
  func.func @transform_0(%arg0: i32) -> (i32, i32, i32) {
    %c0_i32 = arith.constant 0 : i32
    %c0_i32_0 = arith.constant 0 : i32
    %c0_i32_1 = arith.constant 0 : i32
    return %arg0, %c0_i32, %c0_i32_0 : i32, i32, i32
  }
  func.func @transform_1(%arg0: i32) -> (i32, i32) {
    %c0_i32 = arith.constant 0 : i32
    %c0_i32_0 = arith.constant 0 : i32
    %c0_i32_1 = arith.constant 0 : i32
    return %c0_i32, %c0_i32_0 : i32, i32
  }
  func.func @transform_2(%arg0: i32) -> (i32, i32) {
    %c0_i32 = arith.constant 0 : i32
    %c0_i32_0 = arith.constant 0 : i32
    %c0_i32_1 = arith.constant 0 : i32
    return %c0_i32, %c0_i32_0 : i32, i32
  }
  func.func @transform_3(%arg0: i32) -> (i32, i32) {
    %c0_i32 = arith.constant 0 : i32
    %c0_i32_0 = arith.constant 0 : i32
    %c0_i32_1 = arith.constant 0 : i32
    return %c0_i32, %c0_i32_0 : i32, i32
  }
  func.func @transform_4(%arg0: i32) -> (i32, i32) {
    %c0_i32 = arith.constant 0 : i32
    %c0_i32_0 = arith.constant 0 : i32
    %c0_i32_1 = arith.constant 0 : i32
    return %c0_i32, %c0_i32_0 : i32, i32
  }
  func.func @transform_5(%arg0: i32) -> (i32, i32, i32) {
    %c0_i32 = arith.constant 0 : i32
    %c0_i32_0 = arith.constant 0 : i32
    %c0_i32_1 = arith.constant 0 : i32
    return %arg0, %c0_i32, %c0_i32_0 : i32, i32, i32
  }
}

</mosaic_0001>

<bundles_post_ra>
// kernel: tpu_custom_call.1
= control target key start
LH: loop header
LB: loop body
LE: loop exit
PB: predicated region body
PF: predicated region fallthrough
CT: control target
= control target key end

     0   :  { %10 = vsyncpa [#allocation3], 0  ;;  %s369_s0 = inlined_call_operand.hbm [shape: f32[2,4,256], index: 0, kind: input, shape index: {}]   ;;  %s370_s1 = inlined_call_operand.vmem [shape: f32[4,2], index: 1, kind: input, shape index: {}]   ;;  %s371_s2 = inlined_call_operand.vmem [shape: f32[1,2], index: 2, kind: input, shape index: {}]   ;;  %s372_s3 = inlined_call_operand.vmem [shape: f32[2,4], index: 3, kind: input, shape index: {}]   ;;  %s373_s4 = inlined_call_operand.vmem [shape: f32[1,4], index: 4, kind: input, shape index: {}]   ;;  %s374_s5 = inlined_call_operand.hbm [shape: f32[2,4,256], index: 5, kind: output, shape index: {}]  }
   0x1   :  { %11 = vsyncpa [#allocation4], 0  ;;  %s280_s18 = smov [#allocation2]   ;;  %s232_s22 = scalar_lea.hbm %s369_s0, 256 }
   0x2   :  { %s17_s19 = sshll.u32 %s280_s18, 4  ;;  %p233_p0 = scmp.ne.s32.totalorder %s369_s0, %s232_s22  ;;  %s18_s19 = int_to_ptr.vmem [resolvable:$true] %s17_s19 }
   0x3   :  { %p236_p1 = scmp.lt.u32.totalorder %s232_s22, %s369_s0 }
   0x5   :  { %p238_p2 = pnand %p236_p1, %p233_p0 }
   0x7   :  { %241 = shalt.err (!%p238_p2)
}
   0x8   :  { %s242_s27 = scalar_lea.vmem %s18_s19, 256  ;;  %p247_p4 = scmp.lt.s32.totalorder %s18_s19, %s18_s19 }
   0x9   :  { %p243_p3 = scmp.ne.s32.totalorder %s18_s19, %s242_s27  ;;  %p248_p5 = scmp.lt.s32.totalorder %s242_s27, %s242_s27 }
   0xb   :  { %p249_p6 = por %p248_p5, %p247_p4 }
   0xd   :  { %p250_p7 = pnand %p249_p6, %p243_p3 }
   0xf   :  { %253 = shalt.err (!%p250_p7)
}
  0x10   :  { %s281_s28 = smov 128   ;;  %s282_s29 = smov 8  }
  0x11   :  { %23 = dma.hbm_to_vmem [thread:$0]  %s369_s0, 256, %s18_s19, [#allocation3], %s281_s28, %s281_s28, %s282_s29  }
  0x12   :  { %276 = dma.done.wait [#allocation3], 256  }
  0x13   :  { %277 = vsyncadd [#allocation3], 4294967040  ;;  %vm43_vm0 = vcmask 1043456   ;;  %v330_v0 = vld [vmem:[#allocation2] sm:$0xff]  ;;  %v332_v1 = vld [vmem:[#allocation2 + $0x8] sm:$0xff]  ;;  %vm62_vm1 = vcmask 11264   ;;  %v99_v39 = vlaneseq }
  0x14   :  { %v39_v2 = vcombine.high %v330_v0, %v330_v0  ;;  %v44_v3 = vsel %vm43_vm0, %v330_v0, 0.0  ;;  %v40_v4 = vcombine.high %v332_v1, %v332_v1  ;;  %v49_v6 = vsel %vm43_vm0, %v332_v1, 0.0  ;;  %v56_v10 = vld [vmem:[%s370_s1] sm:$0xf] }
  0x15   :  { %v203_v27 = vld [vmem:[%s371_s2] ss:$0 sm:$0xff]  ;;  %v100_v41 = vshrl.u32 %v99_v39, 7  ;;  %vm115_vm2 = vcmask 25600  }
  0x16   :  { %v45_v5 = vsel %vm43_vm0, %v39_v2, 0.0  ;;  %v50_v7 = vsel %vm43_vm0, %v40_v4, 0.0  ;;  %v58_v49 = vld [vmem:[%s372_s3] sm:$0x3]  ;;  %s284_s3 = smov [#allocation5]  }
  0x17   :  { %v46_v8 = vadd.f32 %v45_v5, %v44_v3  ;;  %v51_v9 = vadd.f32 %v50_v7, %v49_v6  ;;  %v101_v42 = vsub.s32 0, %v100_v41  ;;  %v206_v2 = vld [vmem:[%s373_s4] ss:$0 sm:$0xff]  ;;  %s191_s4 = sshll.u32 %s284_s3, 4  ;;  %s192_s4 = int_to_ptr.vmem [resolvable:$true] %s191_s4 }
  0x18   :  { %s254_s12 = scalar_lea.vmem %s192_s4, 256  ;;  %p259_p9 = scmp.lt.s32.totalorder %s192_s4, %s192_s4 }
  0x19   :  { %47 = vadd.xlane.f32.xlu0 %v46_v8  ;;  %p255_p8 = scmp.ne.s32.totalorder %s192_s4, %s254_s12  ;;  %p260_p10 = scmp.lt.s32.totalorder %s254_s12, %s254_s12 }
  0x1b   :  { %p261_p11 = por %p260_p10, %p259_p9 }
  0x1d   :  { %52 = vadd.xlane.f32.xlu0 %v51_v9  ;;  %p262_p12 = pnand %p261_p11, %p255_p8 }
  0xa6   :  { %v48_v11 = vpop.xlane.xlu0 %47 }
  0xa7   :  { %v54_v12 = vmul.f32 0.00390625, %v48_v11 }
  0xa9   :  { %v60_v13 = vmul.f32 %v56_v10, %v54_v12 }
  0xaa   :  { %v53_v14 = vpop.xlane.xlu0 %52 }
  0xab   :  { %v63_v15 = vsel %vm62_vm1, %v60_v13, 0.0  ;;  %v55_v16 = vmul.f32 0.00390625, %v53_v14 }
  0xac   :  { %v64_v17 = vrot.slane %v63_v15, 4 }
  0xad   :  { %v61_v18 = vmul.f32 %v56_v10, %v55_v16 }
  0xae   :  { %v65_v19 = vadd.f32 %v64_v17, %v63_v15 }
  0xaf   :  { %v70_v20 = vsel %vm62_vm1, %v61_v18, 0.0 }
  0xb0   :  { %v66_v21 = vrot.slane %v65_v19, 2  ;;  %v71_v22 = vrot.slane %v70_v20, 4 }
  0xb2   :  { %v67_v23 = vadd.f32 %v66_v21, %v65_v19  ;;  %v72_v24 = vadd.f32 %v71_v22, %v70_v20  ;;  %v283_v19 = vmov 839922192  }
  0xb3   :  { %v167_v20 = vunpack.c.l.s4 %v283_v19 }
  0xb4   :  { %v73_v25 = vrot.slane %v72_v24, 2  ;;  %v68_v26 = vrot.slane %v67_v23, 1 }
  0xb5   :  { %v168_v21 = vunpack.c.0.s8 %v167_v20 }
  0xb6   :  { %v74_v28 = vadd.f32 %v73_v25, %v72_v24  ;;  %v69_v29 = vadd.f32 %v68_v26, %v67_v23 }
  0xb7   :  { %v171_v22 = vsub.s32 %v168_v21, %v100_v41 }
  0xb8   :  { %v83_v30 = vadd.f32 %v203_v27, %v69_v29  ;;  %v75_v31 = vrot.slane %v74_v28, 1 }
  0xba   :  { %v204_v32 = vmul.f32 -1.442695, %v83_v30  ;;  %v76_v33 = vadd.f32 %v75_v31, %v74_v28 }
  0xbc   :  { %216 = vpow2.f32 %v204_v32  ;;  %v84_v34 = vadd.f32 %v203_v27, %v76_v33 }
  0xbe   :  { %v205_v35 = vmul.f32 -1.442695, %v84_v34 }
  0xc0   :  { %218 = vpow2.f32 %v205_v35 }
  0xc6   :  { %v217_v36 = vpop.eup %216 }
  0xc7   :  { %v91_v37 = vadd.f32 1.0, %v217_v36 }
  0xc9   :  { %220 = vrcp.f32 %v91_v37 }
  0xca   :  { %v219_v38 = vpop.eup %218 }
  0xcb   :  { %v92_v40 = vadd.f32 1.0, %v219_v38 }
  0xcd   :  { %222 = vrcp.f32 %v92_v40 }
  0xd3   :  { %v221_v43 = vpop.eup %220 }
  0xd4   :  { %v97_v44 = vmul.f32 %v221_v43, %v83_v30 }
  0xd6   :  { %v102_v45 = vrot.slane %v97_v44, %v101_v42 }
  0xd7   :  { %v223_v46 = vpop.eup %222 }
  0xd8   :  { %104 = vbcast.lane.b32.xlu1 %v102_v45, 256  ;;  %v98_v47 = vmul.f32 %v223_v46, %v84_v34 }
  0xda   :  { %v109_v48 = vrot.slane %v98_v47, %v101_v42 }
  0xdc   :  { %111 = vbcast.lane.b32.xlu1 %v109_v48, 256 }
 0x14a   :  { %v105_v50 = vpop.permute.xlu1 %104 }
 0x14b   :  { %v113_v51 = vmul.f32 %v105_v50, %v58_v49 }
 0x14d   :  { %v116_v52 = vsel %vm115_vm2, %v113_v51, 0.0 }
 0x14e   :  { %v117_v53 = vrot.slane %v116_v52, 4  ;;  %v112_v54 = vpop.permute.xlu1 %111 }
 0x14f   :  { %v114_v55 = vmul.f32 %v112_v54, %v58_v49 }
 0x150   :  { %v118_v56 = vadd.f32 %v117_v53, %v116_v52 }
 0x151   :  { %v123_v57 = vsel %vm115_vm2, %v114_v55, 0.0 }
 0x152   :  { %v119_v58 = vrot.slane %v118_v56, 2  ;;  %v124_v59 = vrot.slane %v123_v57, 4 }
 0x154   :  { %v120_v60 = vadd.f32 %v119_v58, %v118_v56  ;;  %v125_v61 = vadd.f32 %v124_v59, %v123_v57 }
 0x156   :  { %v121_v62 = vrot.slane %v120_v60, 1  ;;  %v126_v63 = vrot.slane %v125_v61, 2 }
 0x158   :  { %v122_v3 = vadd.f32 %v121_v62, %v120_v60  ;;  %v127_v4 = vadd.f32 %v126_v63, %v125_v61 }
 0x15a   :  { %v136_v5 = vadd.f32 %v206_v2, %v122_v3  ;;  %v128_v6 = vrot.slane %v127_v4, 1 }
 0x15c   :  { %v207_v7 = vmul.f32 -1.442695, %v136_v5  ;;  %v129_v8 = vadd.f32 %v128_v6, %v127_v4 }
 0x15e   :  { %224 = vpow2.f32 %v207_v7  ;;  %v137_v9 = vadd.f32 %v206_v2, %v129_v8 }
 0x160   :  { %v208_v10 = vmul.f32 -1.442695, %v137_v9 }
 0x162   :  { %226 = vpow2.f32 %v208_v10 }
 0x168   :  { %v225_v11 = vpop.eup %224 }
 0x169   :  { %v144_v12 = vadd.f32 1.0, %v225_v11 }
 0x16b   :  { %228 = vrcp.f32 %v144_v12 }
 0x16c   :  { %v227_v13 = vpop.eup %226 }
 0x16d   :  { %v145_v14 = vadd.f32 1.0, %v227_v13 }
 0x16f   :  { %230 = vrcp.f32 %v145_v14 }
 0x175   :  { %v229_v15 = vpop.eup %228 }
 0x176   :  { %v153_v16 = vrot.slane %v229_v15, %v101_v42 }
 0x178   :  { %155 = vbcast.lane.b32.xlu0 %v153_v16, 256 }
 0x179   :  { %v231_v17 = vpop.eup %230 }
 0x17a   :  { %v160_v18 = vrot.slane %v231_v17, %v101_v42 }
 0x17c   :  { %162 = vbcast.lane.b32.xlu1 %v160_v18, 256 }
 0x1ea   :  { %v156_v23 = vpop.permute.xlu0 %155 }
 0x1eb   :  { %v172_v24 = vrot.slane %v156_v23, %v171_v22 }
 0x1ed   :  { %v182_v25 = vmul.f32 %v172_v24, %v330_v0 }
 0x1ee   :  { %v163_v26 = vpop.permute.xlu1 %162 }
 0x1ef   :  { %184 = vst [vmem:[#allocation5] sm:$0xff] %v182_v25  ;;  %v179_v27 = vrot.slane %v163_v26, %v171_v22 }
 0x1f1   :  { %v183_v28 = vmul.f32 %v179_v27, %v332_v1 }
 0x1f3   :  { %185 = vst [vmem:[#allocation5 + $0x8] sm:$0xff] %v183_v28 }
 0x1f4   :  { %265 = shalt.err (!%p262_p12)
}
 0x1f5   :  { %s266_s15 = scalar_lea.hbm %s374_s5, 256 }
 0x1f6   :  { %p267_p13 = scmp.ne.s32.totalorder %s374_s5, %s266_s15  ;;  %p270_p0 = scmp.lt.u32.totalorder %s266_s15, %s374_s5 }
 0x1f8   :  { %p272_p1 = pnand %p270_p0, %p267_p13 }
 0x1fa   :  { %275 = shalt.err (!%p272_p1)
}
 0x1fb   :  { %197 = dma.vmem_to_hbm [thread:$0]  %s192_s4, 256, %s374_s5, [#allocation4], %s281_s28, %s281_s28, %s282_s29  }
 0x1fc   :  { %278 = dma.done.wait [#allocation4], 256  }
 0x1fd   :  { %279 = vsyncadd [#allocation4], 4294967040 }
 0x1fe   :  { %201 = vsyncpa [#allocation3], 1 }
 0x1ff   :  { %202 = vsyncpa [#allocation4], 1 }

</bundles_post_ra>
